<compile_context>
chip_gen: v7x
topology: tpu7x:2x2x1
jax: 0.10.0
libtpu: 0.0.40
codegen_flags: <defaults>
</compile_context>

<pallas_src>
import jax
import jax.numpy as jnp
from jax.experimental import pallas as pl
from jax.experimental.pallas import tpu as pltpu

LN_EPS = 1e-5       # nn.LayerNorm default (adapter pre/post LN)
OUT_LN_EPS = 1e-5   # config.layer_norm_eps for RobertaOutput.LayerNorm


def _layer_norm(x, gamma, beta, eps):
    mean = jnp.mean(x, axis=-1, keepdims=True)
    var = jnp.mean((x - mean) ** 2, axis=-1, keepdims=True)
    return (x - mean) * jax.lax.rsqrt(var + eps) * gamma + beta


def roberta_output_kernel(
    hs_ref,        # [tm, I]  hidden_states rows (FFN intermediate output)
    inp_ref,       # [tm, D]  input_tensor rows (residual for the final LN)
    w_dense_ref,   # [I, D]   dense weight (transposed)
    b_dense_ref,   # [1, D]
    g_pre_ref,     # [1, D]   adapter pre-LN gamma
    b_pre_ref,     # [1, D]
    w_down_ref,    # [D, dp]  adapter down-proj (transposed, lane-padded)
    b_down_ref,    # [1, dp]
    w_up_ref,      # [dp, D]  adapter up-proj (transposed, lane-padded)
    b_up_ref,      # [1, D]
    g_post_ref,    # [1, D]   adapter post-LN gamma
    b_post_ref,    # [1, D]
    g_out_ref,     # [1, D]   RobertaOutput.LayerNorm gamma
    b_out_ref,     # [1, D]
    o_ref,         # [tm, D]
):
    # --- RobertaOutput.dense (MXU, f32 accumulation) --------------------------
    x = jnp.dot(hs_ref[...], w_dense_ref[...],
                preferred_element_type=jnp.float32) + b_dense_ref[...]
    # Dropout is the identity at inference.
    # TODO(synk): training-mode dropout (RNG mask) is not implemented.

    # --- AdapterController: pre-LN -> down -> ReLU -> up -> post-LN -> +x -----
    z = _layer_norm(x, g_pre_ref[...], b_pre_ref[...], LN_EPS)
    h = jnp.dot(z, w_down_ref[...],
                preferred_element_type=jnp.float32) + b_down_ref[...]
    h = jnp.maximum(h, 0.0)                        # nonlinearity == "relu"
    y = jnp.dot(h, w_up_ref[...],
                preferred_element_type=jnp.float32) + b_up_ref[...]
    y = _layer_norm(y, g_post_ref[...], b_post_ref[...], LN_EPS)
    x = x + y                                      # adapter residual

    # --- final LayerNorm(hidden_states + input_tensor) ------------------------
    out = _layer_norm(x + inp_ref[...].astype(jnp.float32),
                      g_out_ref[...], b_out_ref[...], OUT_LN_EPS)
    o_ref[...] = out.astype(o_ref.dtype)


def _round_up(x, m):
    return (x + m - 1) // m * m


def _fit_row_tile(tm, n8, I, D, dp, act_itemsize, w_itemsize, vmem_budget):
    """Shrink the row tile (multiple of 8) until the estimated double-buffered
    VMEM footprint fits the budget."""
    # Grid-invariant weights / vectors (count x2: Pallas double-buffers specs).
    resident = 2 * w_itemsize * (I * D + D * dp + dp * D + 7 * D + dp)
    # Streamed bytes per row (hs + inp inputs, output), double-buffered.
    per_row = 2 * (act_itemsize * (I + D) + act_itemsize * D)
    tm = min(tm, n8)
    tm = max(8, (tm // 8) * 8)
    while tm > 8 and resident + tm * per_row > vmem_budget:
        tm -= 8
    return tm


def roberta_output(hidden_states, input_tensor, params, *,
                   tm=512, d_pad_multiple=128,
                   vmem_limit_bytes=64 * 1024 * 1024):
    """hidden_states: [B, S, I], input_tensor: [B, S, D]  ->  [B, S, D]."""
    B, S, I = hidden_states.shape
    D = input_tensor.shape[-1]
    N = B * S

    hs2 = hidden_states.reshape(N, I)
    in2 = input_tensor.reshape(N, D)

    # Lane-pad the adapter bottleneck dim to a multiple of 128 so both adapter
    # matmuls are lane-dense on the MXU.  Exact: relu(x@0 + 0) = 0 and the
    # padded rows of w_up are zero, so padded channels contribute nothing.
    w_down, b_down, w_up = params["w_down"], params["b_down"], params["w_up"]
    d = w_down.shape[1]
    dp = _round_up(d, d_pad_multiple)
    if dp != d:
        w_down = jnp.pad(w_down, ((0, 0), (0, dp - d)))
        b_down = jnp.pad(b_down, ((0, dp - d),))
        w_up = jnp.pad(w_up, ((0, dp - d), (0, 0)))

    # Row tile: as large as fits the scoped VMEM budget (leave ~25% headroom).
    n8 = _round_up(N, 8)
    tm_eff = _fit_row_tile(
        tm, n8, I, D, dp,
        act_itemsize=hidden_states.dtype.itemsize,
        w_itemsize=params["w_dense"].dtype.itemsize,
        vmem_budget=int(0.75 * vmem_limit_bytes),
    )
    N_pad = _round_up(n8, tm_eff)
    if N_pad != N:
        # Padded rows are computed (LN of zeros is finite) and sliced off.
        hs2 = jnp.pad(hs2, ((0, N_pad - N), (0, 0)))
        in2 = jnp.pad(in2, ((0, N_pad - N), (0, 0)))

    # Broadcast-friendly 2D shapes for vectors.
    b_dense = params["b_dense"].reshape(1, D)
    g_pre = params["g_pre"].reshape(1, D)
    b_pre = params["b_pre"].reshape(1, D)
    b_down = b_down.reshape(1, dp)
    b_up = params["b_up"].reshape(1, D)
    g_post = params["g_post"].reshape(1, D)
    b_post = params["b_post"].reshape(1, D)
    g_out = params["g_out"].reshape(1, D)
    b_out = params["b_out"].reshape(1, D)

    row = lambda shape: pl.BlockSpec(shape, lambda i: (i, 0))   # streamed per tile
    full = lambda shape: pl.BlockSpec(shape, lambda i: (0, 0))  # grid-invariant

    out = pl.pallas_call(
        roberta_output_kernel,
        out_shape=jax.ShapeDtypeStruct((N_pad, D), input_tensor.dtype),
        grid_spec=pltpu.PrefetchScalarGridSpec(
            num_scalar_prefetch=0,
            grid=(N_pad // tm_eff,),
            in_specs=[
                row((tm_eff, I)),      # hidden_states rows
                row((tm_eff, D)),      # input_tensor rows
                full((I, D)),          # w_dense
                full((1, D)),          # b_dense
                full((1, D)),          # g_pre
                full((1, D)),          # b_pre
                full((D, dp)),         # w_down
                full((1, dp)),         # b_down
                full((dp, D)),         # w_up
                full((1, D)),          # b_up
                full((1, D)),          # g_post
                full((1, D)),          # b_post
                full((1, D)),          # g_out
                full((1, D)),          # b_out
            ],
            out_specs=pl.BlockSpec((tm_eff, D), lambda i: (i, 0)),
        ),
        compiler_params=pltpu.CompilerParams(
            dimension_semantics=("parallel",),
            vmem_limit_bytes=vmem_limit_bytes,
        ),
    )(hs2, in2, params["w_dense"], b_dense, g_pre, b_pre,
      w_down, b_down, w_up, b_up, g_post, b_post, g_out, b_out)

    return out[:N].reshape(B, S, D)


def init_params(key, intermediate_size, hidden_size, reduction_factor):
    """Deterministic parameter init matching the module's __init__ shapes."""
    I, D = intermediate_size, hidden_size
    d = D // reduction_factor
    ks = jax.random.split(key, 12)
    u = lambda k, shape, b: jax.random.uniform(k, shape, jnp.float32, -b, b)
    sI, sD, sd = 1.0 / (I ** 0.5), 1.0 / (D ** 0.5), 1.0 / (d ** 0.5)
    return {
        # nn.Linear(I, D): weight (D, I) -> stored transposed as (I, D)
        "w_dense": u(ks[0], (I, D), sI), "b_dense": u(ks[1], (D,), sI),
        # adapter: nn.Linear(D, d) and nn.Linear(d, D), stored transposed
        "w_down": u(ks[2], (D, d), sD), "b_down": u(ks[3], (d,), sD),
        "w_up": u(ks[4], (d, D), sd), "b_up": u(ks[5], (D,), sd),
        # LayerNorm params (randomized a bit so the test is meaningful)
        "g_pre": 1.0 + 0.1 * jax.random.normal(ks[6], (D,), jnp.float32),
        "b_pre": 0.1 * jax.random.normal(ks[7], (D,), jnp.float32),
        "g_post": 1.0 + 0.1 * jax.random.normal(ks[8], (D,), jnp.float32),
        "b_post": 0.1 * jax.random.normal(ks[9], (D,), jnp.float32),
        "g_out": 1.0 + 0.1 * jax.random.normal(ks[10], (D,), jnp.float32),
        "b_out": 0.1 * jax.random.normal(ks[11], (D,), jnp.float32),
    }


def reference(hidden_states, input_tensor, params):
    """Pure-JAX reference of RobertaOutput.forward (eval mode)."""
    x = hidden_states @ params["w_dense"] + params["b_dense"]
    z = _layer_norm(x, params["g_pre"], params["b_pre"], LN_EPS)
    h = jnp.maximum(z @ params["w_down"] + params["b_down"], 0.0)
    y = h @ params["w_up"] + params["b_up"]
    y = _layer_norm(y, params["g_post"], params["b_post"], LN_EPS)
    x = x + y
    return _layer_norm(x + input_tensor, params["g_out"], params["b_out"], OUT_LN_EPS)


if __name__ == "__main__":
    B, S = 2, 8
    hidden_size = 32          # config.hidden_size (D)
    intermediate_size = 64    # config.intermediate_size (I)
    reduction_factor = 4      # adapter bottleneck d = 8

    key = jax.random.PRNGKey(0)
    kh, ki, kp = jax.random.split(key, 3)
    hidden_states = jax.random.normal(kh, (B, S, intermediate_size), jnp.float32)
    input_tensor = jax.random.normal(ki, (B, S, hidden_size), jnp.float32)
    params = init_params(kp, intermediate_size, hidden_size, reduction_factor)

    out = roberta_output(hidden_states, input_tensor, params)
    out = jax.block_until_ready(out)

    ref = reference(hidden_states, input_tensor, params)
    assert out.shape == (B, S, hidden_size)
    assert jnp.allclose(out, ref, atol=1e-4, rtol=1e-4), \
        float(jnp.max(jnp.abs(out - ref)))

    print("KERNEL_OK")
</pallas_src>

<mosaic_0001>
module attributes {stable_mosaic.version = 11 : i64} {
  func.func @roberta_output_kernel(%arg0: i32, %arg1: memref<16x64xf32, #tpu.memory_space<vmem>>, %arg2: memref<16x32xf32, #tpu.memory_space<vmem>>, %arg3: memref<64x32xf32, #tpu.memory_space<vmem>>, %arg4: memref<1x32xf32, #tpu.memory_space<vmem>>, %arg5: memref<1x32xf32, #tpu.memory_space<vmem>>, %arg6: memref<1x32xf32, #tpu.memory_space<vmem>>, %arg7: memref<32x128xf32, #tpu.memory_space<vmem>>, %arg8: memref<1x128xf32, #tpu.memory_space<vmem>>, %arg9: memref<128x32xf32, #tpu.memory_space<vmem>>, %arg10: memref<1x32xf32, #tpu.memory_space<vmem>>, %arg11: memref<1x32xf32, #tpu.memory_space<vmem>>, %arg12: memref<1x32xf32, #tpu.memory_space<vmem>>, %arg13: memref<1x32xf32, #tpu.memory_space<vmem>>, %arg14: memref<1x32xf32, #tpu.memory_space<vmem>>, %arg15: memref<16x32xf32, #tpu.memory_space<vmem>>) attributes {dimension_semantics = [#tpu.dimension_semantics<parallel>], iteration_bounds = array<i64: 1>, scalar_prefetch = 0 : i64, scratch_operands = 0 : i64, tpu.core_type = #tpu.core_type<tc>, window_params = [{transform_indices = @transform_0, window_bounds = array<i64: 16, 64>}, {transform_indices = @transform_1, window_bounds = array<i64: 16, 32>}, {pipeline_mode = #tpu.pipeline_mode<synchronous>, transform_indices = @transform_2, window_bounds = array<i64: 64, 32>}, {pipeline_mode = #tpu.pipeline_mode<synchronous>, transform_indices = @transform_3, window_bounds = array<i64: 1, 32>}, {pipeline_mode = #tpu.pipeline_mode<synchronous>, transform_indices = @transform_4, window_bounds = array<i64: 1, 32>}, {pipeline_mode = #tpu.pipeline_mode<synchronous>, transform_indices = @transform_5, window_bounds = array<i64: 1, 32>}, {pipeline_mode = #tpu.pipeline_mode<synchronous>, transform_indices = @transform_6, window_bounds = array<i64: 32, 128>}, {pipeline_mode = #tpu.pipeline_mode<synchronous>, transform_indices = @transform_7, window_bounds = array<i64: 1, 128>}, {pipeline_mode = #tpu.pipeline_mode<synchronous>, transform_indices = @transform_8, window_bounds = array<i64: 128, 32>}, {pipeline_mode = #tpu.pipeline_mode<synchronous>, transform_indices = @transform_9, window_bounds = array<i64: 1, 32>}, {pipeline_mode = #tpu.pipeline_mode<synchronous>, transform_indices = @transform_10, window_bounds = array<i64: 1, 32>}, {pipeline_mode = #tpu.pipeline_mode<synchronous>, transform_indices = @transform_11, window_bounds = array<i64: 1, 32>}, {pipeline_mode = #tpu.pipeline_mode<synchronous>, transform_indices = @transform_12, window_bounds = array<i64: 1, 32>}, {pipeline_mode = #tpu.pipeline_mode<synchronous>, transform_indices = @transform_13, window_bounds = array<i64: 1, 32>}, {transform_indices = @transform_14, window_bounds = array<i64: 16, 32>}]} {
    %c0 = arith.constant 0 : index
    %c0_0 = arith.constant 0 : index
    %0 = vector.load %arg1[%c0, %c0_0] : memref<16x64xf32, #tpu.memory_space<vmem>>, vector<16x64xf32>
    %c0_1 = arith.constant 0 : index
    %c0_2 = arith.constant 0 : index
    %1 = vector.load %arg3[%c0_1, %c0_2] : memref<64x32xf32, #tpu.memory_space<vmem>>, vector<64x32xf32>
    %cst = arith.constant dense<0.000000e+00> : vector<16x32xf32>
    %2 = tpu.matmul %0, %1, %cst {dimension_numbers = #tpu.dot_dimension_numbers<[1], [0], [0], [1], [0, 0, 1, 1], [], []>} : vector<16x64xf32>, vector<64x32xf32>, vector<16x32xf32> -> vector<16x32xf32>
    %c0_3 = arith.constant 0 : index
    %c0_4 = arith.constant 0 : index
    %3 = vector.load %arg4[%c0_3, %c0_4] : memref<1x32xf32, #tpu.memory_space<vmem>>, vector<1x32xf32>
    %4 = vector.broadcast %3 : vector<1x32xf32> to vector<16x32xf32>
    %5 = arith.addf %2, %4 : vector<16x32xf32>
    %c0_5 = arith.constant 0 : index
    %c0_6 = arith.constant 0 : index
    %6 = vector.load %arg5[%c0_5, %c0_6] : memref<1x32xf32, #tpu.memory_space<vmem>>, vector<1x32xf32>
    %c0_7 = arith.constant 0 : index
    %c0_8 = arith.constant 0 : index
    %7 = vector.load %arg6[%c0_7, %c0_8] : memref<1x32xf32, #tpu.memory_space<vmem>>, vector<1x32xf32>
    %cst_9 = arith.constant dense<0.000000e+00> : vector<16xf32>
    %8 = vector.multi_reduction <add>, %5, %cst_9 [1] : vector<16x32xf32> to vector<16xf32>
    %9 = vector.shape_cast %8 : vector<16xf32> to vector<16x1xf32>
    %cst_10 = arith.constant 3.200000e+01 : f32
    %10 = vector.broadcast %cst_10 : f32 to vector<16x1xf32>
    %11 = arith.divf %9, %10 : vector<16x1xf32>
    %12 = vector.broadcast %11 : vector<16x1xf32> to vector<16x32xf32>
    %13 = arith.subf %5, %12 : vector<16x32xf32>
    %14 = arith.mulf %13, %13 : vector<16x32xf32>
    %cst_11 = arith.constant dense<0.000000e+00> : vector<16xf32>
    %15 = vector.multi_reduction <add>, %14, %cst_11 [1] : vector<16x32xf32> to vector<16xf32>
    %16 = vector.shape_cast %15 : vector<16xf32> to vector<16x1xf32>
    %cst_12 = arith.constant 3.200000e+01 : f32
    %17 = vector.broadcast %cst_12 : f32 to vector<16x1xf32>
    %18 = arith.divf %16, %17 : vector<16x1xf32>
    %19 = vector.broadcast %11 : vector<16x1xf32> to vector<16x32xf32>
    %20 = arith.subf %5, %19 : vector<16x32xf32>
    %cst_13 = arith.constant 9.99999974E-6 : f32
    %21 = vector.broadcast %cst_13 : f32 to vector<16x1xf32>
    %22 = arith.addf %18, %21 : vector<16x1xf32>
    %23 = math.rsqrt %22 : vector<16x1xf32>
    %24 = vector.broadcast %23 : vector<16x1xf32> to vector<16x32xf32>
    %25 = arith.mulf %20, %24 : vector<16x32xf32>
    %26 = vector.broadcast %6 : vector<1x32xf32> to vector<16x32xf32>
    %27 = arith.mulf %25, %26 : vector<16x32xf32>
    %28 = vector.broadcast %7 : vector<1x32xf32> to vector<16x32xf32>
    %29 = arith.addf %27, %28 : vector<16x32xf32>
    %c0_14 = arith.constant 0 : index
    %c0_15 = arith.constant 0 : index
    %30 = vector.load %arg7[%c0_14, %c0_15] : memref<32x128xf32, #tpu.memory_space<vmem>>, vector<32x128xf32>
    %cst_16 = arith.constant dense<0.000000e+00> : vector<16x128xf32>
    %31 = tpu.matmul %29, %30, %cst_16 {dimension_numbers = #tpu.dot_dimension_numbers<[1], [0], [0], [1], [0, 0, 1, 1], [], []>} : vector<16x32xf32>, vector<32x128xf32>, vector<16x128xf32> -> vector<16x128xf32>
    %c0_17 = arith.constant 0 : index
    %c0_18 = arith.constant 0 : index
    %32 = vector.load %arg8[%c0_17, %c0_18] : memref<1x128xf32, #tpu.memory_space<vmem>>, vector<1x128xf32>
    %33 = vector.broadcast %32 : vector<1x128xf32> to vector<16x128xf32>
    %34 = arith.addf %31, %33 : vector<16x128xf32>
    %cst_19 = arith.constant 0.000000e+00 : f32
    %35 = vector.broadcast %cst_19 : f32 to vector<16x128xf32>
    %36 = arith.maximumf %34, %35 : vector<16x128xf32>
    %c0_20 = arith.constant 0 : index
    %c0_21 = arith.constant 0 : index
    %37 = vector.load %arg9[%c0_20, %c0_21] : memref<128x32xf32, #tpu.memory_space<vmem>>, vector<128x32xf32>
    %cst_22 = arith.constant dense<0.000000e+00> : vector<16x32xf32>
    %38 = tpu.matmul %36, %37, %cst_22 {dimension_numbers = #tpu.dot_dimension_numbers<[1], [0], [0], [1], [0, 0, 1, 1], [], []>} : vector<16x128xf32>, vector<128x32xf32>, vector<16x32xf32> -> vector<16x32xf32>
    %c0_23 = arith.constant 0 : index
    %c0_24 = arith.constant 0 : index
    %39 = vector.load %arg10[%c0_23, %c0_24] : memref<1x32xf32, #tpu.memory_space<vmem>>, vector<1x32xf32>
    %40 = vector.broadcast %39 : vector<1x32xf32> to vector<16x32xf32>
    %41 = arith.addf %38, %40 : vector<16x32xf32>
    %c0_25 = arith.constant 0 : index
    %c0_26 = arith.constant 0 : index
    %42 = vector.load %arg11[%c0_25, %c0_26] : memref<1x32xf32, #tpu.memory_space<vmem>>, vector<1x32xf32>
    %c0_27 = arith.constant 0 : index
    %c0_28 = arith.constant 0 : index
    %43 = vector.load %arg12[%c0_27, %c0_28] : memref<1x32xf32, #tpu.memory_space<vmem>>, vector<1x32xf32>
    %cst_29 = arith.constant dense<0.000000e+00> : vector<16xf32>
    %44 = vector.multi_reduction <add>, %41, %cst_29 [1] : vector<16x32xf32> to vector<16xf32>
    %45 = vector.shape_cast %44 : vector<16xf32> to vector<16x1xf32>
    %cst_30 = arith.constant 3.200000e+01 : f32
    %46 = vector.broadcast %cst_30 : f32 to vector<16x1xf32>
    %47 = arith.divf %45, %46 : vector<16x1xf32>
    %48 = vector.broadcast %47 : vector<16x1xf32> to vector<16x32xf32>
    %49 = arith.subf %41, %48 : vector<16x32xf32>
    %50 = arith.mulf %49, %49 : vector<16x32xf32>
    %cst_31 = arith.constant dense<0.000000e+00> : vector<16xf32>
    %51 = vector.multi_reduction <add>, %50, %cst_31 [1] : vector<16x32xf32> to vector<16xf32>
    %52 = vector.shape_cast %51 : vector<16xf32> to vector<16x1xf32>
    %cst_32 = arith.constant 3.200000e+01 : f32
    %53 = vector.broadcast %cst_32 : f32 to vector<16x1xf32>
    %54 = arith.divf %52, %53 : vector<16x1xf32>
    %55 = vector.broadcast %47 : vector<16x1xf32> to vector<16x32xf32>
    %56 = arith.subf %41, %55 : vector<16x32xf32>
    %cst_33 = arith.constant 9.99999974E-6 : f32
    %57 = vector.broadcast %cst_33 : f32 to vector<16x1xf32>
    %58 = arith.addf %54, %57 : vector<16x1xf32>
    %59 = math.rsqrt %58 : vector<16x1xf32>
    %60 = vector.broadcast %59 : vector<16x1xf32> to vector<16x32xf32>
    %61 = arith.mulf %56, %60 : vector<16x32xf32>
    %62 = vector.broadcast %42 : vector<1x32xf32> to vector<16x32xf32>
    %63 = arith.mulf %61, %62 : vector<16x32xf32>
    %64 = vector.broadcast %43 : vector<1x32xf32> to vector<16x32xf32>
    %65 = arith.addf %63, %64 : vector<16x32xf32>
    %66 = arith.addf %5, %65 : vector<16x32xf32>
    %c0_34 = arith.constant 0 : index
    %c0_35 = arith.constant 0 : index
    %67 = vector.load %arg2[%c0_34, %c0_35] : memref<16x32xf32, #tpu.memory_space<vmem>>, vector<16x32xf32>
    %68 = arith.addf %66, %67 : vector<16x32xf32>
    %c0_36 = arith.constant 0 : index
    %c0_37 = arith.constant 0 : index
    %69 = vector.load %arg13[%c0_36, %c0_37] : memref<1x32xf32, #tpu.memory_space<vmem>>, vector<1x32xf32>
    %c0_38 = arith.constant 0 : index
    %c0_39 = arith.constant 0 : index
    %70 = vector.load %arg14[%c0_38, %c0_39] : memref<1x32xf32, #tpu.memory_space<vmem>>, vector<1x32xf32>
    %cst_40 = arith.constant dense<0.000000e+00> : vector<16xf32>
    %71 = vector.multi_reduction <add>, %68, %cst_40 [1] : vector<16x32xf32> to vector<16xf32>
    %72 = vector.shape_cast %71 : vector<16xf32> to vector<16x1xf32>
    %cst_41 = arith.constant 3.200000e+01 : f32
    %73 = vector.broadcast %cst_41 : f32 to vector<16x1xf32>
    %74 = arith.divf %72, %73 : vector<16x1xf32>
    %75 = vector.broadcast %74 : vector<16x1xf32> to vector<16x32xf32>
    %76 = arith.subf %68, %75 : vector<16x32xf32>
    %77 = arith.mulf %76, %76 : vector<16x32xf32>
    %cst_42 = arith.constant dense<0.000000e+00> : vector<16xf32>
    %78 = vector.multi_reduction <add>, %77, %cst_42 [1] : vector<16x32xf32> to vector<16xf32>
    %79 = vector.shape_cast %78 : vector<16xf32> to vector<16x1xf32>
    %cst_43 = arith.constant 3.200000e+01 : f32
    %80 = vector.broadcast %cst_43 : f32 to vector<16x1xf32>
    %81 = arith.divf %79, %80 : vector<16x1xf32>
    %82 = vector.broadcast %74 : vector<16x1xf32> to vector<16x32xf32>
    %83 = arith.subf %68, %82 : vector<16x32xf32>
    %cst_44 = arith.constant 9.99999974E-6 : f32
    %84 = vector.broadcast %cst_44 : f32 to vector<16x1xf32>
    %85 = arith.addf %81, %84 : vector<16x1xf32>
    %86 = math.rsqrt %85 : vector<16x1xf32>
    %87 = vector.broadcast %86 : vector<16x1xf32> to vector<16x32xf32>
    %88 = arith.mulf %83, %87 : vector<16x32xf32>
    %89 = vector.broadcast %69 : vector<1x32xf32> to vector<16x32xf32>
    %90 = arith.mulf %88, %89 : vector<16x32xf32>
    %91 = vector.broadcast %70 : vector<1x32xf32> to vector<16x32xf32>
    %92 = arith.addf %90, %91 : vector<16x32xf32>
    %c0_45 = arith.constant 0 : index
    %c0_46 = arith.constant 0 : index
    %93 = vector.load %arg15[%c0_45, %c0_46] : memref<16x32xf32, #tpu.memory_space<vmem>>, vector<16x32xf32>
    tpu.vector_store %arg15[%c0_45, %c0_46], %92 {strides = array<i32>} : memref<16x32xf32, #tpu.memory_space<vmem>>, vector<16x32xf32>,
    return
  }
  func.func @transform_0(%arg0: i32) -> (i32, i32) {
    %c0_i32 = arith.constant 0 : i32
    %c0_i32_0 = arith.constant 0 : i32
    return %arg0, %c0_i32 : i32, i32
  }
  func.func @transform_1(%arg0: i32) -> (i32, i32) {
    %c0_i32 = arith.constant 0 : i32
    %c0_i32_0 = arith.constant 0 : i32
    return %arg0, %c0_i32 : i32, i32
  }
  func.func @transform_2(%arg0: i32) -> (i32, i32) {
    %c0_i32 = arith.constant 0 : i32
    %c0_i32_0 = arith.constant 0 : i32
    %c0_i32_1 = arith.constant 0 : i32
    return %c0_i32, %c0_i32_0 : i32, i32
  }
  func.func @transform_3(%arg0: i32) -> (i32, i32) {
    %c0_i32 = arith.constant 0 : i32
    %c0_i32_0 = arith.constant 0 : i32
    %c0_i32_1 = arith.constant 0 : i32
    return %c0_i32, %c0_i32_0 : i32, i32
  }
  func.func @transform_4(%arg0: i32) -> (i32, i32) {
    %c0_i32 = arith.constant 0 : i32
    %c0_i32_0 = arith.constant 0 : i32
    %c0_i32_1 = arith.constant 0 : i32
    return %c0_i32, %c0_i32_0 : i32, i32
  }
  func.func @transform_5(%arg0: i32) -> (i32, i32) {
    %c0_i32 = arith.constant 0 : i32
    %c0_i32_0 = arith.constant 0 : i32
    %c0_i32_1 = arith.constant 0 : i32
    return %c0_i32, %c0_i32_0 : i32, i32
  }
  func.func @transform_6(%arg0: i32) -> (i32, i32) {
    %c0_i32 = arith.constant 0 : i32
    %c0_i32_0 = arith.constant 0 : i32
    %c0_i32_1 = arith.constant 0 : i32
    return %c0_i32, %c0_i32_0 : i32, i32
  }
  func.func @transform_7(%arg0: i32) -> (i32, i32) {
    %c0_i32 = arith.constant 0 : i32
    %c0_i32_0 = arith.constant 0 : i32
    %c0_i32_1 = arith.constant 0 : i32
    return %c0_i32, %c0_i32_0 : i32, i32
  }
  func.func @transform_8(%arg0: i32) -> (i32, i32) {
    %c0_i32 = arith.constant 0 : i32
    %c0_i32_0 = arith.constant 0 : i32
    %c0_i32_1 = arith.constant 0 : i32
    return %c0_i32, %c0_i32_0 : i32, i32
  }
  func.func @transform_9(%arg0: i32) -> (i32, i32) {
    %c0_i32 = arith.constant 0 : i32
    %c0_i32_0 = arith.constant 0 : i32
    %c0_i32_1 = arith.constant 0 : i32
    return %c0_i32, %c0_i32_0 : i32, i32
  }
  func.func @transform_10(%arg0: i32) -> (i32, i32) {
    %c0_i32 = arith.constant 0 : i32
    %c0_i32_0 = arith.constant 0 : i32
    %c0_i32_1 = arith.constant 0 : i32
    return %c0_i32, %c0_i32_0 : i32, i32
  }
  func.func @transform_11(%arg0: i32) -> (i32, i32) {
    %c0_i32 = arith.constant 0 : i32
    %c0_i32_0 = arith.constant 0 : i32
    %c0_i32_1 = arith.constant 0 : i32
    return %c0_i32, %c0_i32_0 : i32, i32
  }
  func.func @transform_12(%arg0: i32) -> (i32, i32) {
    %c0_i32 = arith.constant 0 : i32
    %c0_i32_0 = arith.constant 0 : i32
    %c0_i32_1 = arith.constant 0 : i32
    return %c0_i32, %c0_i32_0 : i32, i32
  }
  func.func @transform_13(%arg0: i32) -> (i32, i32) {
    %c0_i32 = arith.constant 0 : i32
    %c0_i32_0 = arith.constant 0 : i32
    %c0_i32_1 = arith.constant 0 : i32
    return %c0_i32, %c0_i32_0 : i32, i32
  }
  func.func @transform_14(%arg0: i32) -> (i32, i32) {
    %c0_i32 = arith.constant 0 : i32
    %c0_i32_0 = arith.constant 0 : i32
    return %arg0, %c0_i32 : i32, i32
  }
}

</mosaic_0001>

<bundles_post_ra>
// kernel: tpu_custom_call.1
= control target key start
LH: loop header
LB: loop body
LE: loop exit
PB: predicated region body
PF: predicated region fallthrough
CT: control target
= control target key end

     0   :  { %19 = vsyncpa [#allocation3], 0  ;;  %s1572_s0 = inlined_call_operand.hbm [shape: f32[16,64], index: 0, kind: input, shape index: {}]   ;;  %s1573_s1 = inlined_call_operand.hbm [shape: f32[16,32], index: 1, kind: input, shape index: {}]   ;;  %s1574_s2 = inlined_call_operand.hbm [shape: f32[64,32], index: 2, kind: input, shape index: {}]   ;;  %s1575_s3 = inlined_call_operand.hbm [shape: f32[1,32], index: 3, kind: input, shape index: {}]   ;;  %s1576_s4 = inlined_call_operand.hbm [shape: f32[1,32], index: 4, kind: input, shape index: {}]   ;;  %s1577_s5 = inlined_call_operand.hbm [shape: f32[1,32], index: 5, kind: input, shape index: {}]   ;;  %s1578_s6 = inlined_call_operand.hbm [shape: f32[32,128], index: 6, kind: input, shape index: {}]   ;;  %s1579_s7 = inlined_call_operand.hbm [shape: f32[1,128], index: 7, kind: input, shape index: {}]   ;;  %s1580_s8 = inlined_call_operand.hbm [shape: f32[128,32], index: 8, kind: input, shape index: {}]   ;;  %s1581_s9 = inlined_call_operand.hbm [shape: f32[1,32], index: 9, kind: input, shape index: {}]   ;;  %s1582_s10 = inlined_call_operand.hbm [shape: f32[1,32], index: 10, kind: input, shape index: {}]   ;;  %s1583_s11 = inlined_call_operand.hbm [shape: f32[1,32], index: 11, kind: input, shape index: {}]   ;;  %s1584_s12 = inlined_call_operand.hbm [shape: f32[1,32], index: 12, kind: input, shape index: {}]   ;;  %s1585_s13 = inlined_call_operand.hbm [shape: f32[1,32], index: 13, kind: input, shape index: {}]   ;;  %s1586_s14 = inlined_call_operand.hbm [shape: f32[16,32], index: 14, kind: output, shape index: {}]  }
   0x1   :  { %20 = vsyncpa [#allocation6], 0 }
   0x2   :  { %21 = vsyncpa [#allocation9], 0 }
   0x3   :  { %22 = vsyncpa [#allocation12], 0 }
   0x4   :  { %23 = vsyncpa [#allocation15], 0 }
   0x5   :  { %24 = vsyncpa [#allocation18], 0 }
   0x6   :  { %25 = vsyncpa [#allocation21], 0 }
   0x7   :  { %26 = vsyncpa [#allocation24], 0 }
   0x8   :  { %27 = vsyncpa [#allocation4], 0  ;;  %s1222_s29 = smov [#allocation5]   ;;  %s1223_s15 = smov [#allocation8]  }
   0x9   :  { %s45_s30 = sshll.u32 %s1222_s29, 4  ;;  %s70_s16 = sshll.u32 %s1223_s15, 4  ;;  %s46_s30 = int_to_ptr.vmem [resolvable:$true] %s45_s30  ;;  %s1314_s16 = int_to_ptr.vmem [resolvable:$true] %s70_s16 }
   0xa   :  { %s874_s19 = scalar_lea.hbm %s1573_s1, 256 }
   0xb   :  { %p875_p0 = scmp.ne.s32.totalorder %s1573_s1, %s874_s19  ;;  %p878_p1 = scmp.lt.u32.totalorder %s874_s19, %s1573_s1 }
   0xd   :  { %p880_p2 = pnand %p878_p1, %p875_p0 }
   0xf   :  { %883 = shalt.err (!%p880_p2)
}
  0x10   :  { %s884_s24 = scalar_lea.vmem %s46_s30, 256  ;;  %p889_p4 = scmp.lt.s32.totalorder %s46_s30, %s46_s30 }
  0x11   :  { %p885_p3 = scmp.ne.s32.totalorder %s46_s30, %s884_s24  ;;  %p890_p5 = scmp.lt.s32.totalorder %s884_s24, %s884_s24 }
  0x13   :  { %p891_p6 = por %p890_p5, %p889_p4 }
  0x15   :  { %p892_p7 = pnand %p891_p6, %p885_p3 }
  0x17   :  { %895 = shalt.err (!%p892_p7)
}
  0x18   :  { %s1224_s25 = smov 128   ;;  %s1225_s26 = smov 8  }
  0x19   :  { %51 = dma.hbm_to_vmem [thread:$0]  %s1573_s1, 256, %s46_s30, [#allocation6], %s1224_s25, %s1224_s25, %s1225_s26  }
  0x1a   :  { %s896_s17 = scalar_lea.hbm %s1575_s3, 16 }
  0x1b   :  { %p897_p8 = scmp.ne.s32.totalorder %s1575_s3, %s896_s17  ;;  %p900_p9 = scmp.lt.u32.totalorder %s896_s17, %s1575_s3 }
  0x1d   :  { %p902_p10 = pnand %p900_p9, %p897_p8 }
  0x1f   :  { %905 = shalt.err (!%p902_p10)
}
  0x20   :  { %s906_s22 = scalar_lea.vmem %s1314_s16, 16  ;;  %s910_s1 = scalar_lea.vmem %s1314_s16, 32 }
  0x21   :  { %p907_p11 = scmp.ne.s32.totalorder %s1314_s16, %s906_s22  ;;  %p911_p12 = scmp.lt.s32.totalorder %s1314_s16, %s1314_s16 }
  0x22   :  { %p912_p13 = scmp.lt.s32.totalorder %s910_s1, %s906_s22 }
  0x24   :  { %p913_p0 = por %p912_p13, %p911_p12 }
  0x26   :  { %p914_p1 = pnand %p913_p0, %p907_p11 }
  0x28   :  { %917 = shalt.err (!%p914_p1)
}
  0x29   :  { %73 = dma.hbm_to_vmem [thread:$0]  %s1575_s3, 16, %s1314_s16, [#allocation9]  }
  0x2a   :  { %s1226_s24 = smov [#allocation11]   ;;  %s1227_s28 = smov [#allocation14]  }
  0x2b   :  { %s90_s27 = sshll.u32 %s1226_s24, 4  ;;  %s112_s29 = sshll.u32 %s1227_s28, 4  ;;  %s91_s27 = int_to_ptr.vmem [resolvable:$true] %s90_s27  ;;  %s113_s29 = int_to_ptr.vmem [resolvable:$true] %s112_s29 }
  0x2c   :  { %s918_s18 = scalar_lea.hbm %s1577_s5, 16 }
  0x2d   :  { %p919_p2 = scmp.ne.s32.totalorder %s1577_s5, %s918_s18  ;;  %p922_p3 = scmp.lt.u32.totalorder %s918_s18, %s1577_s5 }
  0x2f   :  { %p924_p4 = pnand %p922_p3, %p919_p2 }
  0x31   :  { %927 = shalt.err (!%p924_p4)
}
  0x32   :  { %s928_s3 = scalar_lea.vmem %s91_s27, 16  ;;  %s932_s16 = scalar_lea.vmem %s91_s27, 32 }
  0x33   :  { %p929_p5 = scmp.ne.s32.totalorder %s91_s27, %s928_s3  ;;  %p933_p6 = scmp.lt.s32.totalorder %s91_s27, %s91_s27 }
  0x34   :  { %p934_p7 = scmp.lt.s32.totalorder %s932_s16, %s928_s3 }
  0x36   :  { %p935_p8 = por %p934_p7, %p933_p6 }
  0x38   :  { %p936_p9 = pnand %p935_p8, %p929_p5 }
  0x3a   :  { %939 = shalt.err (!%p936_p9)
}
  0x3b   :  { %93 = dma.hbm_to_vmem [thread:$0]  %s1577_s5, 16, %s91_s27, [#allocation12]  }
  0x3c   :  { %s940_s28 = scalar_lea.hbm %s1579_s7, 16 }
  0x3d   :  { %p941_p10 = scmp.ne.s32.totalorder %s1579_s7, %s940_s28  ;;  %p944_p11 = scmp.lt.u32.totalorder %s940_s28, %s1579_s7 }
  0x3f   :  { %p946_p12 = pnand %p944_p11, %p941_p10 }
  0x41   :  { %949 = shalt.err (!%p946_p12)
}
  0x42   :  { %s950_s20 = scalar_lea.vmem %s113_s29, 16  ;;  %s954_s21 = scalar_lea.vmem %s113_s29, 32 }
  0x43   :  { %p951_p13 = scmp.ne.s32.totalorder %s113_s29, %s950_s20  ;;  %p955_p0 = scmp.lt.s32.totalorder %s113_s29, %s113_s29 }
  0x44   :  { %p956_p1 = scmp.lt.s32.totalorder %s954_s21, %s950_s20 }
  0x46   :  { %p957_p2 = por %p956_p1, %p955_p0 }
  0x48   :  { %p958_p3 = pnand %p957_p2, %p951_p13 }
  0x4a   :  { %961 = shalt.err (!%p958_p3)
}
  0x4b   :  { %115 = dma.hbm_to_vmem [thread:$0]  %s1579_s7, 16, %s113_s29, [#allocation15]  }
  0x4c   :  { %s1228_s22 = smov [#allocation17]   ;;  %s1229_s16 = smov [#allocation20]  }
  0x4d   :  { %s134_s3 = sshll.u32 %s1228_s22, 4  ;;  %s154_s1 = sshll.u32 %s1229_s16, 4  ;;  %s135_s3 = int_to_ptr.vmem [resolvable:$true] %s134_s3  ;;  %s155_s1 = int_to_ptr.vmem [resolvable:$true] %s154_s1 }
  0x4e   :  { %s962_s24 = scalar_lea.hbm %s1581_s9, 16 }
  0x4f   :  { %p963_p4 = scmp.ne.s32.totalorder %s1581_s9, %s962_s24  ;;  %p966_p5 = scmp.lt.u32.totalorder %s962_s24, %s1581_s9 }
  0x51   :  { %p968_p6 = pnand %p966_p5, %p963_p4 }
  0x53   :  { %971 = shalt.err (!%p968_p6)
}
  0x54   :  { %s972_s7 = scalar_lea.vmem %s135_s3, 16  ;;  %s976_s29 = scalar_lea.vmem %s135_s3, 32 }
  0x55   :  { %p973_p7 = scmp.ne.s32.totalorder %s135_s3, %s972_s7  ;;  %p977_p8 = scmp.lt.s32.totalorder %s135_s3, %s135_s3 }
  0x56   :  { %p978_p9 = scmp.lt.s32.totalorder %s976_s29, %s972_s7 }
  0x58   :  { %p979_p10 = por %p978_p9, %p977_p8 }
  0x5a   :  { %p980_p11 = pnand %p979_p10, %p973_p7 }
  0x5c   :  { %983 = shalt.err (!%p980_p11)
}
  0x5d   :  { %137 = dma.hbm_to_vmem [thread:$0]  %s1581_s9, 16, %s135_s3, [#allocation18]  }
  0x5e   :  { %s984_s27 = scalar_lea.hbm %s1583_s11, 16 }
  0x5f   :  { %p985_p12 = scmp.ne.s32.totalorder %s1583_s11, %s984_s27  ;;  %p988_p13 = scmp.lt.u32.totalorder %s984_s27, %s1583_s11 }
  0x61   :  { %p990_p0 = pnand %p988_p13, %p985_p12 }
  0x63   :  { %993 = shalt.err (!%p990_p0)
}
  0x64   :  { %s994_s24 = scalar_lea.vmem %s155_s1, 16  ;;  %s998_s28 = scalar_lea.vmem %s155_s1, 32 }
  0x65   :  { %p995_p1 = scmp.ne.s32.totalorder %s155_s1, %s994_s24  ;;  %p999_p2 = scmp.lt.s32.totalorder %s155_s1, %s155_s1 }
  0x66   :  { %p1000_p3 = scmp.lt.s32.totalorder %s998_s28, %s994_s24 }
  0x68   :  { %p1001_p4 = por %p1000_p3, %p999_p2 }
  0x6a   :  { %p1002_p5 = pnand %p1001_p4, %p995_p1 }
  0x6c   :  { %1005 = shalt.err (!%p1002_p5)
}
  0x6d   :  { %157 = dma.hbm_to_vmem [thread:$0]  %s1583_s11, 16, %s155_s1, [#allocation21]  }
  0x6e   :  { %s1230_s15 = smov [#allocation2]   ;;  %s1231_s18 = smov [#allocation7]  }
  0x6f   :  { %s33_s17 = sshll.u32 %s1230_s15, 4  ;;  %s57_s7 = sshll.u32 %s1231_s18, 4  ;;  %s34_s17 = int_to_ptr.vmem [resolvable:$true] %s33_s17  ;;  %s1397_s7 = int_to_ptr.vmem [resolvable:$true] %s57_s7 }
  0x70   :  { %s1006_s20 = scalar_lea.hbm %s1572_s0, 256 }
  0x71   :  { %p1007_p6 = scmp.ne.s32.totalorder %s1572_s0, %s1006_s20  ;;  %p1010_p7 = scmp.lt.u32.totalorder %s1006_s20, %s1572_s0 }
  0x73   :  { %p1012_p8 = pnand %p1010_p7, %p1007_p6 }
  0x75   :  { %1015 = shalt.err (!%p1012_p8)
}
  0x76   :  { %s1016_s11 = scalar_lea.vmem %s34_s17, 256  ;;  %p1021_p10 = scmp.lt.s32.totalorder %s34_s17, %s34_s17 }
  0x77   :  { %p1017_p9 = scmp.ne.s32.totalorder %s34_s17, %s1016_s11  ;;  %p1022_p11 = scmp.lt.s32.totalorder %s1016_s11, %s1016_s11 }
  0x79   :  { %p1023_p12 = por %p1022_p11, %p1021_p10 }
  0x7b   :  { %p1024_p13 = pnand %p1023_p12, %p1017_p9 }
  0x7d   :  { %1027 = shalt.err (!%p1024_p13)
}
  0x7e   :  { %39 = dma.hbm_to_vmem [thread:$0]  %s1572_s0, 256, %s34_s17, [#allocation3], %s1224_s25, %s1224_s25, %s1225_s26  }
  0x7f   :  { %s1028_s24 = scalar_lea.hbm %s1574_s2, 1024 }
  0x80   :  { %p1029_p0 = scmp.ne.s32.totalorder %s1574_s2, %s1028_s24  ;;  %p1032_p1 = scmp.lt.u32.totalorder %s1028_s24, %s1574_s2 }
  0x82   :  { %p1034_p2 = pnand %p1032_p1, %p1029_p0 }
  0x84   :  { %1037 = shalt.err (!%p1034_p2)
}
  0x85   :  { %s1038_s18 = scalar_lea.vmem %s1397_s7, 1024  ;;  %p1043_p4 = scmp.lt.s32.totalorder %s1397_s7, %s1397_s7 }
  0x86   :  { %p1039_p3 = scmp.ne.s32.totalorder %s1397_s7, %s1038_s18  ;;  %p1044_p5 = scmp.lt.s32.totalorder %s1038_s18, %s1038_s18 }
  0x88   :  { %p1045_p6 = por %p1044_p5, %p1043_p4 }
  0x8a   :  { %p1046_p7 = pnand %p1045_p6, %p1039_p3 }
  0x8c   :  { %1049 = shalt.err (!%p1046_p7)
}
  0x8d   :  { %63 = dma.hbm_to_vmem [thread:$0]  %s1574_s2, 1024, %s1397_s7, [#allocation6], %s1224_s25, %s1224_s25, %s1225_s26  }
  0x8e   :  { %s1232_s29 = smov [#allocation10]   ;;  %s1233_s20 = smov [#allocation13]  }
  0x8f   :  { %s80_s19 = sshll.u32 %s1232_s29, 4  ;;  %s99_s21 = sshll.u32 %s1233_s20, 4  ;;  %s81_s19 = int_to_ptr.vmem [resolvable:$true] %s80_s19  ;;  %s1434_s21 = int_to_ptr.vmem [resolvable:$true] %s99_s21 }
  0x90   :  { %s1050_s22 = scalar_lea.hbm %s1576_s4, 16 }
  0x91   :  { %p1051_p8 = scmp.ne.s32.totalorder %s1576_s4, %s1050_s22  ;;  %p1054_p9 = scmp.lt.u32.totalorder %s1050_s22, %s1576_s4 }
  0x93   :  { %p1056_p10 = pnand %p1054_p9, %p1051_p8 }
  0x95   :  { %1059 = shalt.err (!%p1056_p10)
}
  0x96   :  { %s1060_s2 = scalar_lea.vmem %s81_s19, 16  ;;  %s1064_s7 = scalar_lea.vmem %s81_s19, 32 }
  0x97   :  { %p1061_p11 = scmp.ne.s32.totalorder %s81_s19, %s1060_s2  ;;  %p1065_p12 = scmp.lt.s32.totalorder %s81_s19, %s81_s19 }
  0x98   :  { %p1066_p13 = scmp.lt.s32.totalorder %s1064_s7, %s1060_s2 }
  0x9a   :  { %p1067_p0 = por %p1066_p13, %p1065_p12 }
  0x9c   :  { %p1068_p1 = pnand %p1067_p0, %p1061_p11 }
  0x9e   :  { %1071 = shalt.err (!%p1068_p1)
}
  0x9f   :  { %83 = dma.hbm_to_vmem [thread:$0]  %s1576_s4, 16, %s81_s19, [#allocation9]  }
  0xa0   :  { %s1072_s3 = scalar_lea.hbm %s1578_s6, 512 }
  0xa1   :  { %p1073_p2 = scmp.ne.s32.totalorder %s1578_s6, %s1072_s3  ;;  %p1076_p3 = scmp.lt.u32.totalorder %s1072_s3, %s1578_s6 }
  0xa3   :  { %p1078_p4 = pnand %p1076_p3, %p1073_p2 }
  0xa5   :  { %1081 = shalt.err (!%p1078_p4)
}
  0xa6   :  { %s1082_s29 = scalar_lea.vmem %s1434_s21, 512  ;;  %p1087_p6 = scmp.lt.s32.totalorder %s1434_s21, %s1434_s21 }
  0xa7   :  { %p1083_p5 = scmp.ne.s32.totalorder %s1434_s21, %s1082_s29  ;;  %p1088_p7 = scmp.lt.s32.totalorder %s1082_s29, %s1082_s29 }
  0xa9   :  { %p1089_p8 = por %p1088_p7, %p1087_p6 }
  0xab   :  { %p1090_p9 = pnand %p1089_p8, %p1083_p5 }
  0xad   :  { %1093 = shalt.err (!%p1090_p9)
}
  0xae   :  { %105 = dma.hbm_to_vmem [thread:$0]  %s1578_s6, 512, %s1434_s21, [#allocation12], %s1224_s25, %s1224_s25, %s1225_s26  }
  0xaf   :  { %s1234_s20 = smov [#allocation16]   ;;  %s1235_s27 = smov [#allocation19]  }
  0xb0   :  { %s121_s5 = sshll.u32 %s1234_s20, 4  ;;  %s144_s22 = sshll.u32 %s1235_s27, 4  ;;  %s122_s5 = int_to_ptr.vmem [resolvable:$true] %s121_s5  ;;  %s145_s22 = int_to_ptr.vmem [resolvable:$true] %s144_s22 }
  0xb1   :  { %s1094_s16 = scalar_lea.hbm %s1580_s8, 2048 }
  0xb2   :  { %p1095_p10 = scmp.ne.s32.totalorder %s1580_s8, %s1094_s16  ;;  %p1098_p11 = scmp.lt.u32.totalorder %s1094_s16, %s1580_s8 }
  0xb4   :  { %p1100_p12 = pnand %p1098_p11, %p1095_p10 }
  0xb6   :  { %1103 = shalt.err (!%p1100_p12)
}
  0xb7   :  { %s1104_s6 = scalar_lea.vmem %s122_s5, 2048  ;;  %p1109_p0 = scmp.lt.s32.totalorder %s122_s5, %s122_s5 }
  0xb8   :  { %p1105_p13 = scmp.ne.s32.totalorder %s122_s5, %s1104_s6  ;;  %p1110_p1 = scmp.lt.s32.totalorder %s1104_s6, %s1104_s6 }
  0xba   :  { %p1111_p2 = por %p1110_p1, %p1109_p0 }
  0xbc   :  { %p1112_p3 = pnand %p1111_p2, %p1105_p13 }
  0xbe   :  { %1115 = shalt.err (!%p1112_p3)
}
  0xbf   :  { %127 = dma.hbm_to_vmem [thread:$0]  %s1580_s8, 2048, %s122_s5, [#allocation15], %s1224_s25, %s1224_s25, %s1225_s26  }
  0xc0   :  { %s1116_s3 = scalar_lea.hbm %s1582_s10, 16 }
  0xc1   :  { %p1117_p4 = scmp.ne.s32.totalorder %s1582_s10, %s1116_s3  ;;  %p1120_p5 = scmp.lt.u32.totalorder %s1116_s3, %s1582_s10 }
  0xc3   :  { %p1122_p6 = pnand %p1120_p5, %p1117_p4 }
  0xc5   :  { %1125 = shalt.err (!%p1122_p6)
}
  0xc6   :  { %s1126_s29 = scalar_lea.vmem %s145_s22, 16  ;;  %s1130_s4 = scalar_lea.vmem %s145_s22, 32 }
  0xc7   :  { %p1127_p7 = scmp.ne.s32.totalorder %s145_s22, %s1126_s29  ;;  %p1131_p8 = scmp.lt.s32.totalorder %s145_s22, %s145_s22 }
  0xc8   :  { %p1132_p9 = scmp.lt.s32.totalorder %s1130_s4, %s1126_s29 }
  0xca   :  { %p1133_p10 = por %p1132_p9, %p1131_p8 }
  0xcc   :  { %p1134_p11 = pnand %p1133_p10, %p1127_p7 }
  0xce   :  { %1137 = shalt.err (!%p1134_p11)
}
  0xcf   :  { %147 = dma.hbm_to_vmem [thread:$0]  %s1582_s10, 16, %s145_s22, [#allocation18]  }
  0xd0   :  { %s1236_s20 = smov [#allocation22]   ;;  %s1237_s27 = smov [#allocation23]  }
  0xd1   :  { %s164_s5 = sshll.u32 %s1236_s20, 4  ;;  %s174_s11 = sshll.u32 %s1237_s27, 4  ;;  %s165_s5 = int_to_ptr.vmem [resolvable:$true] %s164_s5  ;;  %s175_s11 = int_to_ptr.vmem [resolvable:$true] %s174_s11 }
  0xd2   :  { %s1138_s30 = scalar_lea.hbm %s1584_s12, 16 }
  0xd3   :  { %p1139_p12 = scmp.ne.s32.totalorder %s1584_s12, %s1138_s30  ;;  %p1142_p13 = scmp.lt.u32.totalorder %s1138_s30, %s1584_s12 }
  0xd5   :  { %p1144_p0 = pnand %p1142_p13, %p1139_p12 }
  0xd7   :  { %1147 = shalt.err (!%p1144_p0)
}
  0xd8   :  { %s1148_s10 = scalar_lea.vmem %s165_s5, 16  ;;  %s1152_s22 = scalar_lea.vmem %s165_s5, 32 }
  0xd9   :  { %p1149_p1 = scmp.ne.s32.totalorder %s165_s5, %s1148_s10  ;;  %p1153_p2 = scmp.lt.s32.totalorder %s165_s5, %s165_s5 }
  0xda   :  { %p1154_p3 = scmp.lt.s32.totalorder %s1152_s22, %s1148_s10 }
  0xdc   :  { %p1155_p4 = por %p1154_p3, %p1153_p2 }
  0xde   :  { %p1156_p5 = pnand %p1155_p4, %p1149_p1 }
  0xe0   :  { %1159 = shalt.err (!%p1156_p5)
}
  0xe1   :  { %167 = dma.hbm_to_vmem [thread:$0]  %s1584_s12, 16, %s165_s5, [#allocation21]  }
  0xe2   :  { %s1160_s3 = scalar_lea.hbm %s1585_s13, 16 }
  0xe3   :  { %p1161_p6 = scmp.ne.s32.totalorder %s1585_s13, %s1160_s3  ;;  %p1164_p7 = scmp.lt.u32.totalorder %s1160_s3, %s1585_s13 }
  0xe5   :  { %p1166_p8 = pnand %p1164_p7, %p1161_p6 }
  0xe7   :  { %1169 = shalt.err (!%p1166_p8)
}
  0xe8   :  { %s1170_s29 = scalar_lea.vmem %s175_s11, 16  ;;  %s1174_s4 = scalar_lea.vmem %s175_s11, 32 }
  0xe9   :  { %p1171_p9 = scmp.ne.s32.totalorder %s175_s11, %s1170_s29  ;;  %p1175_p10 = scmp.lt.s32.totalorder %s175_s11, %s175_s11 }
  0xea   :  { %p1176_p11 = scmp.lt.s32.totalorder %s1174_s4, %s1170_s29 }
  0xec   :  { %p1177_p12 = por %p1176_p11, %p1175_p10 }
  0xee   :  { %p1178_p13 = pnand %p1177_p12, %p1171_p9 }
  0xf0   :  { %1181 = shalt.err (!%p1178_p13)
}
  0xf1   :  { %177 = dma.hbm_to_vmem [thread:$0]  %s1585_s13, 16, %s175_s11, [#allocation24]  }
  0xf2   :  { %1204 = dma.done.wait [#allocation3], 256  }
  0xf3   :  { %1205 = vsyncadd [#allocation3], 4294967040 }
  0xf4   :  { %1206 = dma.done.wait [#allocation6], 1280  }
  0xf5   :  { %1207 = vsyncadd [#allocation6], 4294966016 }
  0xf6   :  { %1208 = dma.done.wait [#allocation9], 32  }
  0xf7   :  { %1209 = vsyncadd [#allocation9], 4294967264 }
  0xf8   :  { %1210 = dma.done.wait [#allocation12], 528  }
  0xf9   :  { %1211 = vsyncadd [#allocation12], 4294966768 }
  0xfa   :  { %1212 = dma.done.wait [#allocation15], 2064  }
  0xfb   :  { %1213 = vsyncadd [#allocation15], 4294965232 }
  0xfc   :  { %1214 = dma.done.wait [#allocation18], 32  }
  0xfd   :  { %1215 = vsyncadd [#allocation18], 4294967264 }
  0xfe   :  { %1216 = dma.done.wait [#allocation21], 32  }
  0xff   :  { %1217 = vsyncadd [#allocation21], 4294967264 }
 0x100   :  { %1218 = dma.done.wait [#allocation24], 16  }
 0x101   :  { %1219 = vsyncadd [#allocation24], 4294967280  ;;  %v222_v0 = vld [vmem:[#allocation7] sm:$0xff]  ;;  %v223_v1 = vld [vmem:[#allocation7 + $0x8] sm:$0xff]  ;;  %vm237_vm0 = vcmask 523264   ;;  %vm321_vm1 = vcmask 261120  }
 0x102   :  { %v224_v2 = vld [vmem:[#allocation7 + $0x10] sm:$0xff]  ;;  %v789_v3 = vpack.c.bf16 %v223_v1, %v222_v0  ;;  %v225_v4 = vld [vmem:[#allocation7 + $0x18] sm:$0xff]  ;;  %v226_v6 = vld [vmem:[#allocation7 + $0x20] sm:$0xff]  ;;  %s1238_s13 = smov [#allocation25]  }
 0x103   :  { %v793_v5 = vpack.c.bf16 %v225_v4, %v224_v2  ;;  %v227_v7 = vld [vmem:[#allocation7 + $0x28] sm:$0xff]  ;;  %v220_v8 = vld [vmem:[#allocation2] sm:$0xff]  ;;  %v228_v10 = vld [vmem:[#allocation7 + $0x30] sm:$0xff]  ;;  %s658_s19 = sshll.u32 %s1238_s13, 4  ;;  %s659_s19 = int_to_ptr.vmem [resolvable:$true] %s658_s19 }
 0x104   :  { %790 = vmatprep.subr.bf16.mxu0 %v789_v3  ;;  %740 = vmatprep.mubr.msk.f32.mxu0 %vm237_vm0, %v220_v8  ;;  %v797_v9 = vpack.c.bf16 %v227_v7, %v226_v6  ;;  %v229_v11 = vld [vmem:[#allocation7 + $0x38] sm:$0xff]  ;;  %v221_v13 = vld [vmem:[#allocation2 + $0x8] sm:$0xff]  ;;  %v677_v14 = vld [vmem:[#allocation8] ss:$0 sm:$0xff]  ;;  %s1182_s20 = scalar_lea.vmem %s659_s19, 256  ;;  %p1187_p1 = scmp.lt.s32.totalorder %s659_s19, %s659_s19 }
 0x105   :  { %792 = vmatpush3.bf16.msra.mxu0 %v789_v3  ;;  %v801_v12 = vpack.c.bf16 %v229_v11, %v228_v10  ;;  %v365_v31 = vld [vmem:[#allocation13] sm:$0xff]  ;;  %v366_v32 = vld [vmem:[#allocation13 + $0x8] sm:$0xff]  ;;  %v367_v34 = vld [vmem:[#allocation13 + $0x10] sm:$0xff]  ;;  %p1183_p0 = scmp.ne.s32.totalorder %s659_s19, %s1182_s20  ;;  %p1188_p2 = scmp.lt.s32.totalorder %s1182_s20, %s1182_s20 }
 0x106   :  { %794 = vmatprep.subr.bf16.mxu0 %v793_v5  ;;  %v805_v33 = vpack.c.bf16 %v366_v32, %v365_v31  ;;  %v368_v35 = vld [vmem:[#allocation13 + $0x18] sm:$0xff]  ;;  %v459_v37 = vld [vmem:[#allocation16] sm:$0xff]  ;;  %v460_v38 = vld [vmem:[#allocation16 + $0x8] sm:$0xff] }
 0x107   :  { %v809_v36 = vpack.c.bf16 %v368_v35, %v367_v34  ;;  %v461_v39 = vld [vmem:[#allocation16 + $0x10] sm:$0xff]  ;;  %v813_v40 = vpack.c.bf16 %v460_v38, %v459_v37  ;;  %v462_v41 = vld [vmem:[#allocation16 + $0x18] sm:$0xff]  ;;  %v463_v43 = vld [vmem:[#allocation16 + $0x20] sm:$0xff]  ;;  %p1189_p3 = por %p1188_p2, %p1187_p1 }
 0x108   :  { %v817_v42 = vpack.c.bf16 %v462_v41, %v461_v39  ;;  %v464_v44 = vld [vmem:[#allocation16 + $0x28] sm:$0xff]  ;;  %v465_v46 = vld [vmem:[#allocation16 + $0x30] sm:$0xff]  ;;  %v466_v47 = vld [vmem:[#allocation16 + $0x38] sm:$0xff] }
 0x109   :  { %796 = vmatpush3.bf16.msra.mxu0 %v793_v5  ;;  %814 = vmatprep.subr.bf16.mxu1 %v813_v40  ;;  %v821_v45 = vpack.c.bf16 %v464_v44, %v463_v43  ;;  %v825_v48 = vpack.c.bf16 %v466_v47, %v465_v46  ;;  %v467_v49 = vld [vmem:[#allocation16 + $0x40] sm:$0xff]  ;;  %v468_v50 = vld [vmem:[#allocation16 + $0x48] sm:$0xff]  ;;  %v469_v52 = vld [vmem:[#allocation16 + $0x50] sm:$0xff]  ;;  %p1190_p4 = pnand %p1189_p3, %p1183_p0 }
 0x10a   :  { %798 = vmatprep.subr.bf16.mxu0 %v797_v9  ;;  %816 = vmatpush3.bf16.msra.mxu1 %v813_v40  ;;  %v829_v51 = vpack.c.bf16 %v468_v50, %v467_v49  ;;  %v470_v53 = vld [vmem:[#allocation16 + $0x58] sm:$0xff]  ;;  %v471_v55 = vld [vmem:[#allocation16 + $0x60] sm:$0xff]  ;;  %v472_v56 = vld [vmem:[#allocation16 + $0x68] sm:$0xff] }
 0x10b   :  { %818 = vmatprep.subr.bf16.mxu1 %v817_v42  ;;  %v833_v54 = vpack.c.bf16 %v470_v53, %v469_v52  ;;  %v837_v57 = vpack.c.bf16 %v472_v56, %v471_v55  ;;  %v680_v1 = vld [vmem:[#allocation10] ss:$0 sm:$0xff]  ;;  %v681_v3 = vld [vmem:[#allocation11] ss:$0 sm:$0xff]  ;;  %v473_v10 = vld [vmem:[#allocation16 + $0x70] sm:$0xff] }
 0x10c   :  { %v474_v11 = vld [vmem:[#allocation16 + $0x78] sm:$0xff]  ;;  %v686_v46 = vld [vmem:[#allocation19] ss:$0 sm:$0xff]  ;;  %v687_v49 = vld [vmem:[#allocation20] ss:$0 sm:$0xff] }
 0x10d   :  { %800 = vmatpush3.bf16.msra.mxu0 %v797_v9 }
 0x10e   :  { %802 = vmatprep.subr.bf16.mxu0 %v801_v12  ;;  %820 = vmatpush3.bf16.msra.mxu1 %v817_v42 }
 0x10f   :  { %822 = vmatprep.subr.bf16.mxu1 %v821_v45 }
 0x111   :  { %804 = vmatpush3.bf16.msra.mxu0 %v801_v12  ;;  %v841_v12 = vpack.c.bf16 %v474_v11, %v473_v10 }
 0x112   :  { %806 = vmatprep.subr.bf16.mxu0 %v805_v33  ;;  %824 = vmatpush3.bf16.msra.mxu1 %v821_v45 }
 0x113   :  { %826 = vmatprep.subr.bf16.mxu1 %v825_v48 }
 0x114   :  { %741 = vmatmul.mubr.msk.f32.vlgmr.msra.gmra.mrb[0].mxu0 %vm237_vm0, %v221_v13  ;;  %v682_v13 = vld [vmem:[#allocation14] ss:$0 sm:$0xff] }
 0x115   :  { %808 = vmatpush3.bf16.msra.mxu0 %v805_v33 }
 0x116   :  { %810 = vmatprep.subr.bf16.mxu0 %v809_v36  ;;  %828 = vmatpush3.bf16.msra.mxu1 %v825_v48 }
 0x117   :  { %830 = vmatprep.subr.bf16.mxu1 %v829_v51 }
 0x119   :  { %812 = vmatpush3.bf16.msra.mxu0 %v809_v36 }
 0x11a   :  { %832 = vmatpush3.bf16.msra.mxu1 %v829_v51 }
 0x11b   :  { %834 = vmatprep.subr.bf16.mxu1 %v833_v54 }
 0x11e   :  { %836 = vmatpush3.bf16.msra.mxu1 %v833_v54  ;;  %v604_v54 = vld [vmem:[#allocation5 + $0x8] sm:$0xff] }
 0x11f   :  { %838 = vmatprep.subr.bf16.mxu1 %v837_v57 }
 0x122   :  { %840 = vmatpush3.bf16.msra.mxu1 %v837_v57  ;;  %v603_v57 = vld [vmem:[#allocation5] sm:$0xff] }
 0x123   :  { %842 = vmatprep.subr.bf16.mxu1 %v841_v12 }
 0x126   :  { %844 = vmatpush3.bf16.msra.mxu1 %v841_v12 }
 0x1e7   :  { %v742_v15 = vpop.f32.mrb[0].mxu0 }
 0x1e8   :  { %v310_v16 = vpop.f32.mrb[1].mxu0  ;;  %v1523_v18 = vadd.f32 %v742_v15, %v677_v14 }
 0x1e9   :  { %v1521_v17 = vadd.f32 %v677_v14, %v310_v16 }
 0x1ea   :  { %v325_v20 = vsel %vm321_vm1, %v1523_v18, 0.0 }
 0x1eb   :  { %v322_v19 = vsel %vm321_vm1, %v1521_v17, 0.0 }
 0x1ec   :  { %323 = vadd.xlane.f32.xlu0 %v322_v19 }
 0x1f0   :  { %326 = vadd.xlane.f32.xlu0 %v325_v20 }
 0x279   :  { %v324_v21 = vpop.xlane.xlu0 %323 }
 0x27a   :  { %v329_v22 = vmul.f32 0.03125, %v324_v21 }
 0x27c   :  { %v1530_v23 = vsub.f32 %v1521_v17, %v329_v22  ;;  %v685_v22 = vld [vmem:[#allocation17] ss:$0 sm:$0xff] }
 0x27d   :  { %v327_v24 = vpop.xlane.xlu0 %326 }
 0x27e   :  { %v330_v25 = vmul.f32 0.03125, %v327_v24  ;;  %v333_v26 = vmul.f32 %v1530_v23, %v1530_v23 }
 0x280   :  { %v1535_v27 = vsub.f32 %v1523_v18, %v330_v25  ;;  %v335_v28 = vsel %vm321_vm1, %v333_v26, 0.0 }
 0x281   :  { %336 = vadd.xlane.f32.xlu1 %v335_v28 }
 0x282   :  { %v334_v29 = vmul.f32 %v1535_v27, %v1535_v27 }
 0x284   :  { %v338_v30 = vsel %vm321_vm1, %v334_v29, 0.0 }
 0x285   :  { %339 = vadd.xlane.f32.xlu1 %v338_v30 }
 0x30e   :  { %v337_v58 = vpop.xlane.xlu1 %336 }
 0x30f   :  { %v341_v59 = vmul.f32 0.03125, %v337_v58 }
 0x311   :  { %v343_v60 = vadd.f32 1e-05, %v341_v59 }
 0x312   :  { %v340_v61 = vpop.xlane.xlu1 %339 }
 0x313   :  { %862 = vrsqrt.f32 %v343_v60  ;;  %v342_v62 = vmul.f32 0.03125, %v340_v61 }
 0x315   :  { %v344_v63 = vadd.f32 1e-05, %v342_v62 }
 0x317   :  { %864 = vrsqrt.f32 %v344_v63 }
 0x31d   :  { %v863_v0 = vpop.eup %862 }
 0x31e   :  { %v347_v2 = vmul.f32 %v863_v0, %v1530_v23 }
 0x320   :  { %v355_v4 = vmul.f32 %v680_v1, %v347_v2 }
 0x321   :  { %v865_v5 = vpop.eup %864 }
 0x322   :  { %v348_v6 = vmul.f32 %v865_v5, %v1535_v27  ;;  %v363_v7 = vadd.f32 %v681_v3, %v355_v4 }
 0x324   :  { %v356_v8 = vmul.f32 %v680_v1, %v348_v6  ;;  %751 = vmatprep.mubr.msk.f32.mxu0 %vm321_vm1, %v363_v7 }
 0x326   :  { %v364_v9 = vadd.f32 %v681_v3, %v356_v8 }
 0x328   :  { %752 = vmatmul.mubr.msk.f32.vlgmr.msra.gmra.mrb[2].mxu0 %vm321_vm1, %v364_v9 }
 0x3fb   :  { %v753_v14 = vpop.f32.mrb[2].mxu0 }
 0x3fc   :  { %v454_v15 = vadd.f32 %v753_v14, %v682_v13  ;;  %v448_v16 = vpop.f32.mrb[3].mxu0  ;;  %v688_v14 = vld [vmem:[#allocation22] ss:$0 sm:$0xff] }
 0x3fd   :  { %v449_v19 = vadd.f32 %v682_v13, %v448_v16 }
 0x3fe   :  { %v458_v21 = vmax.f32 %v454_v15, 0.0 }
 0x3ff   :  { %v457_v20 = vmax.f32 %v449_v19, 0.0 }
 0x401   :  { %786 = vmatprep.mubr.f32.mxu1 %v457_v20  ;;  %v689_v20 = vld [vmem:[#allocation23] ss:$0 sm:$0xff] }
 0x402   :  { %787 = vmatmul.mubr.f32.vlgmr.msra.gmra.mrb[0].mxu1 %v458_v21 }
 0x4d5   :  { %v788_v23 = vpop.f32.mrb[0].mxu1 }
 0x4d6   :  { %v554_v24 = vadd.f32 %v788_v23, %v685_v22  ;;  %v548_v25 = vpop.f32.mrb[1].mxu1 }
 0x4d7   :  { %v549_v26 = vadd.f32 %v685_v22, %v548_v25 }
 0x4d8   :  { %v562_v27 = vsel %vm321_vm1, %v554_v24, 0.0 }
 0x4d9   :  { %563 = vadd.xlane.f32.xlu1 %v562_v27  ;;  %v559_v28 = vsel %vm321_vm1, %v549_v26, 0.0 }
 0x4da   :  { %560 = vadd.xlane.f32.xlu0 %v559_v28 }
 0x566   :  { %v564_v29 = vpop.xlane.xlu1 %563 }
 0x567   :  { %v566_v30 = vmul.f32 0.03125, %v564_v29  ;;  %v561_v31 = vpop.xlane.xlu0 %560 }
 0x568   :  { %v565_v32 = vmul.f32 0.03125, %v561_v31 }
 0x569   :  { %v568_v33 = vsub.f32 %v554_v24, %v566_v30 }
 0x56a   :  { %v567_v34 = vsub.f32 %v549_v26, %v565_v32 }
 0x56b   :  { %v570_v35 = vmul.f32 %v568_v33, %v568_v33 }
 0x56c   :  { %v569_v36 = vmul.f32 %v567_v34, %v567_v34 }
 0x56d   :  { %v574_v37 = vsel %vm321_vm1, %v570_v35, 0.0 }
 0x56e   :  { %575 = vadd.xlane.f32.xlu1 %v574_v37  ;;  %v571_v38 = vsel %vm321_vm1, %v569_v36, 0.0 }
 0x56f   :  { %572 = vadd.xlane.f32.xlu0 %v571_v38 }
 0x5fb   :  { %v576_v39 = vpop.xlane.xlu1 %575 }
 0x5fc   :  { %v578_v40 = vmul.f32 0.03125, %v576_v39  ;;  %v573_v41 = vpop.xlane.xlu0 %572 }
 0x5fd   :  { %v577_v42 = vmul.f32 0.03125, %v573_v41 }
 0x5fe   :  { %v580_v43 = vadd.f32 1e-05, %v578_v40 }
 0x5ff   :  { %v579_v44 = vadd.f32 1e-05, %v577_v42 }
 0x600   :  { %866 = vrsqrt.f32 %v580_v43 }
 0x601   :  { %868 = vrsqrt.f32 %v579_v44 }
 0x60a   :  { %v867_v45 = vpop.eup %866 }
 0x60b   :  { %v869_v47 = vpop.eup %868  ;;  %v584_v48 = vmul.f32 %v867_v45, %v568_v33 }
 0x60c   :  { %v583_v50 = vmul.f32 %v869_v47, %v567_v34 }
 0x60d   :  { %v592_v51 = vmul.f32 %v686_v46, %v584_v48 }
 0x60e   :  { %v591_v52 = vmul.f32 %v686_v46, %v583_v50 }
 0x60f   :  { %v600_v53 = vadd.f32 %v687_v49, %v592_v51 }
 0x610   :  { %v599_v55 = vadd.f32 %v687_v49, %v591_v52 }
 0x611   :  { %v602_v56 = vadd.f32 %v600_v53, %v1523_v18 }
 0x612   :  { %v601_v58 = vadd.f32 %v599_v55, %v1521_v17 }
 0x613   :  { %v606_v59 = vadd.f32 %v604_v54, %v602_v56 }
 0x614   :  { %v605_v60 = vadd.f32 %v603_v57, %v601_v58 }
 0x615   :  { %v612_v61 = vsel %vm321_vm1, %v606_v59, 0.0 }
 0x616   :  { %613 = vadd.xlane.f32.xlu1 %v612_v61  ;;  %v609_v62 = vsel %vm321_vm1, %v605_v60, 0.0 }
 0x617   :  { %610 = vadd.xlane.f32.xlu0 %v609_v62 }
 0x6a3   :  { %v614_v63 = vpop.xlane.xlu1 %613 }
 0x6a4   :  { %v616_v0 = vmul.f32 0.03125, %v614_v63  ;;  %v611_v1 = vpop.xlane.xlu0 %610 }
 0x6a5   :  { %v615_v2 = vmul.f32 0.03125, %v611_v1 }
 0x6a6   :  { %v618_v3 = vsub.f32 %v606_v59, %v616_v0 }
 0x6a7   :  { %v617_v4 = vsub.f32 %v605_v60, %v615_v2 }
 0x6a8   :  { %v620_v5 = vmul.f32 %v618_v3, %v618_v3 }
 0x6a9   :  { %v619_v6 = vmul.f32 %v617_v4, %v617_v4 }
 0x6aa   :  { %v624_v18 = vsel %vm321_vm1, %v620_v5, 0.0 }
 0x6ab   :  { %625 = vadd.xlane.f32.xlu1 %v624_v18  ;;  %v621_v17 = vsel %vm321_vm1, %v619_v6, 0.0 }
 0x6ac   :  { %622 = vadd.xlane.f32.xlu0 %v621_v17 }
 0x738   :  { %v626_v7 = vpop.xlane.xlu1 %625 }
 0x739   :  { %v628_v8 = vmul.f32 0.03125, %v626_v7  ;;  %v623_v9 = vpop.xlane.xlu0 %622 }
 0x73a   :  { %v627_v10 = vmul.f32 0.03125, %v623_v9 }
 0x73b   :  { %v630_v11 = vadd.f32 1e-05, %v628_v8 }
 0x73c   :  { %v629_v12 = vadd.f32 1e-05, %v627_v10 }
 0x73d   :  { %870 = vrsqrt.f32 %v630_v11 }
 0x73e   :  { %872 = vrsqrt.f32 %v629_v12 }
 0x747   :  { %v871_v13 = vpop.eup %870 }
 0x748   :  { %v873_v15 = vpop.eup %872  ;;  %v634_v16 = vmul.f32 %v871_v13, %v618_v3 }
 0x749   :  { %v633_v19 = vmul.f32 %v873_v15, %v617_v4 }
 0x74a   :  { %v642_v21 = vmul.f32 %v688_v14, %v634_v16 }
 0x74b   :  { %v641_v22 = vmul.f32 %v688_v14, %v633_v19 }
 0x74c   :  { %v650_v23 = vadd.f32 %v689_v20, %v642_v21 }
 0x74d   :  { %v649_v24 = vadd.f32 %v689_v20, %v641_v22 }
 0x74e   :  { %652 = vst.msk [vmem:[#allocation25 + $0x8] sm:$0xff] %vm321_vm1, %v650_v23 }
 0x74f   :  { %651 = vst.msk [vmem:[#allocation25] sm:$0xff] %vm321_vm1, %v649_v24 }
 0x750   :  { %1193 = shalt.err (!%p1190_p4)
}
 0x751   :  { %s1194_s11 = scalar_lea.hbm %s1586_s14, 256 }
 0x752   :  { %p1195_p5 = scmp.ne.s32.totalorder %s1586_s14, %s1194_s11  ;;  %p1198_p6 = scmp.lt.u32.totalorder %s1194_s11, %s1586_s14 }
 0x754   :  { %p1200_p7 = pnand %p1198_p6, %p1195_p5 }
 0x756   :  { %1203 = shalt.err (!%p1200_p7)
}
 0x757   :  { %664 = dma.vmem_to_hbm [thread:$0]  %s659_s19, 256, %s1586_s14, [#allocation4], %s1224_s25, %s1224_s25, %s1225_s26  }
 0x758   :  { %1220 = dma.done.wait [#allocation4], 256  }
 0x759   :  { %1221 = vsyncadd [#allocation4], 4294967040 }
 0x75a   :  { %668 = vsyncpa [#allocation3], 1 }
 0x75b   :  { %669 = vsyncpa [#allocation6], 1 }
 0x75c   :  { %670 = vsyncpa [#allocation9], 1 }
 0x75d   :  { %671 = vsyncpa [#allocation12], 1 }
 0x75e   :  { %672 = vsyncpa [#allocation15], 1 }
 0x75f   :  { %673 = vsyncpa [#allocation18], 1 }
 0x760   :  { %674 = vsyncpa [#allocation21], 1 }
 0x761   :  { %675 = vsyncpa [#allocation24], 1 }
 0x762   :  { %676 = vsyncpa [#allocation4], 1 }

</bundles_post_ra>
